<compile_context>
chip_gen: v5e
topology: v5e:2x2
jax: 0.10.0
libtpu: 0.0.40
codegen_flags: <defaults>
</compile_context>

<pallas_src>
import jax
import jax.numpy as jnp
from jax.experimental import pallas as pl
from jax.experimental.pallas import tpu as pltpu

_MiB = 1024 * 1024


def _round_up(a, m):
    return (a + m - 1) // m * m


# ---------------------------------------------------------------------------
# Kernel body
# ---------------------------------------------------------------------------
def _swiglu_ffn_kernel(x_ref, w1_ref, w2_ref, w3_ref, o_ref, acc_ref):
    # x_ref   : [tm, E_pad]      one tile of tokens (full padded emb on lanes)
    # w1_ref  : [E_pad, tH]      fc1 columns for this hidden chunk
    # w2_ref  : [E_pad, tH]      fc2 columns for this hidden chunk
    # w3_ref  : [tH, E_pad]      fc3 rows for this hidden chunk
    # o_ref   : [tm, E_pad]      output tile (written only on the last k step)
    # acc_ref : [tm, E_pad] f32  VMEM accumulator, persists across hidden axis
    k = pl.program_id(1)
    x = x_ref[...]

    h1 = jnp.dot(x, w1_ref[...], preferred_element_type=jnp.float32)  # [tm, tH]
    h2 = jnp.dot(x, w2_ref[...], preferred_element_type=jnp.float32)  # [tm, tH]

    # SwiGLU gate in f32 (full-rate on v5e, which has no bf16 VPU/EUP).
    g = (h1 * jax.nn.sigmoid(h1)) * h2                                 # [tm, tH]

    # Partial down-projection in the weights' compute dtype, accumulated in f32.
    partial = jnp.dot(g.astype(w3_ref.dtype), w3_ref[...],
                      preferred_element_type=jnp.float32)              # [tm, E_pad]

    @pl.when(k == 0)
    def _first():
        # Direct write: avoids one zero-fill + read pass over the f32 scratch
        # per token tile (relieves the single vst slot, esp. on v5e).
        acc_ref[...] = partial

    @pl.when(k > 0)
    def _accumulate():
        acc_ref[...] += partial

    @pl.when(k == pl.num_programs(1) - 1)
    def _finalize():
        o_ref[...] = acc_ref[...].astype(o_ref.dtype)


# ---------------------------------------------------------------------------
# Hardware-aware defaults
# ---------------------------------------------------------------------------
def _tpu_defaults():
    """Best-effort query: (physical VMEM bytes per core, TensorCores per chip)."""
    phys_vmem = None
    num_tc = 1
    kind = ""
    try:
        kind = jax.devices()[0].device_kind.lower()
    except Exception:
        pass
    try:
        info = pltpu.get_tpu_info()
        v = getattr(info, "vmem_capacity_bytes", None)
        if v:
            phys_vmem = int(v)
    except Exception:
        pass
    if "v7" in kind:
        num_tc = 2
        if phys_vmem is None:
            phys_vmem = 64 * _MiB
    if phys_vmem is None:
        if any(s in kind for s in ("v5 lite", "v5e", "v5litepod", "v6")):
            phys_vmem = 128 * _MiB
        else:
            phys_vmem = 64 * _MiB          # conservative: works everywhere
    return phys_vmem, num_tc


# ---------------------------------------------------------------------------
# Weight preparation (call ONCE at model init, not per forward pass)
# ---------------------------------------------------------------------------
def prepare_ffn_weights(w1, w2, w3, compute_dtype=jnp.bfloat16):
    """Zero-pad E/H to 128 multiples and cast to the MXU compute dtype.

    w1, w2 : [E, H]; w3 : [H, E]  (transposes of the nn.Linear weights).
    Hoisting this out of the hot path removes a full weight read+write per call.
    """
    E, H = w1.shape
    assert w2.shape == (E, H) and w3.shape == (H, E)
    E_pad = _round_up(E, 128)
    H_pad = _round_up(H, 128)
    w1_p = jnp.pad(w1, ((0, E_pad - E), (0, H_pad - H))).astype(compute_dtype)
    w2_p = jnp.pad(w2, ((0, E_pad - E), (0, H_pad - H))).astype(compute_dtype)
    w3_p = jnp.pad(w3, ((0, H_pad - H), (0, E_pad - E))).astype(compute_dtype)
    return w1_p, w2_p, w3_p


# ---------------------------------------------------------------------------
# Forward pass with pre-prepared (padded, casted) weights
# ---------------------------------------------------------------------------
def feedforward_pallas_prepared(x, w1_p, w2_p, w3_p, *,
                                token_tile=None, hidden_tile=None,
                                vmem_limit_bytes=None):
    orig_shape = x.shape
    E = orig_shape[-1]
    T = 1
    for d in orig_shape[:-1]:
        T *= d

    E_pad, H_pad = w1_p.shape
    assert w2_p.shape == (E_pad, H_pad) and w3_p.shape == (H_pad, E_pad)
    assert E <= E_pad
    compute_dtype = w1_p.dtype
    out_dtype = x.dtype

    phys_vmem, num_tc = _tpu_defaults()
    big_part = phys_vmem >= 96 * _MiB          # v5e / v6e (128 MiB VMEM)

    if vmem_limit_bytes is None:
        # Leave headroom for Mosaic internal scratch (f32 h1/h2/g intermediates).
        vmem_limit_bytes = min(phys_vmem - 16 * _MiB, 112 * _MiB) if big_part \
            else max(phys_vmem - 8 * _MiB, 32 * _MiB)

    # --- token tile: the arithmetic-intensity lever (~tm flop/byte) ---------
    if token_tile is None:
        token_tile = 1024 if big_part else 512
    tm = _round_up(min(token_tile, _round_up(T, 8)), 8)
    # v7x: keep >= num_tc token tiles so the "parallel" axis feeds both TCs.
    if num_tc > 1:
        while (T + tm - 1) // tm < num_tc and tm > 8:
            tm = _round_up(max(tm // 2, 8), 8)

    # --- hidden tile: multiple of 128 dividing H_pad -------------------------
    if hidden_tile is None:
        hidden_tile = 512
    th = max(128, min(hidden_tile, H_pad) // 128 * 128)
    while H_pad % th != 0:
        th -= 128

    # --- shrink tiles if the estimated footprint overflows the VMEM budget --
    w_bytes = jnp.dtype(compute_dtype).itemsize
    o_bytes = jnp.dtype(out_dtype).itemsize

    def footprint(tm_, th_):
        f = 2 * tm_ * E_pad * w_bytes                       # x tile, double-buffered
        f += 2 * (2 * E_pad * th_ + th_ * E_pad) * w_bytes  # w1/w2/w3 chunks, x2
        f += 2 * tm_ * E_pad * o_bytes                      # output tile, x2
        f += tm_ * E_pad * 4                                # f32 accumulator
        f += 3 * tm_ * th_ * 4                              # h1/h2/g f32 intermediates
        return f

    budget = int(0.9 * vmem_limit_bytes)
    while footprint(tm, th) > budget and th > 128:
        new_th = max(128, (th // 2) // 128 * 128)
        if new_th == th:
            break
        th = new_th
        while H_pad % th != 0:
            th -= 128
    while footprint(tm, th) > budget and tm > 8:
        tm = _round_up(max(tm // 2, 8), 8)

    T_pad = _round_up(T, tm)
    nk = H_pad // th
    grid = (T_pad // tm, nk)

    # --- activations: pad + cast per call (cheap next to weight streaming) --
    x2d = x.reshape(T, E).astype(compute_dtype)
    x_p = jnp.pad(x2d, ((0, T_pad - T), (0, E_pad - E)))

    # --- advisory cost (weights are re-streamed once per token tile) --------
    n_tok_tiles = T_pad // tm
    cost = pl.CostEstimate(
        flops=6 * T_pad * E_pad * H_pad,
        transcendentals=T_pad * H_pad,
        bytes_accessed=int(
            x_p.size * w_bytes
            + n_tok_tiles * (w1_p.size + w2_p.size + w3_p.size) * w_bytes
            + T_pad * E_pad * o_bytes),
    )

    out_p = pl.pallas_call(
        _swiglu_ffn_kernel,
        out_shape=jax.ShapeDtypeStruct((T_pad, E_pad), out_dtype),
        grid_spec=pltpu.PrefetchScalarGridSpec(
            num_scalar_prefetch=0,
            grid=grid,
            in_specs=[
                pl.BlockSpec((tm, E_pad), lambda i, k: (i, 0)),   # x tile
                pl.BlockSpec((E_pad, th), lambda i, k: (0, k)),   # W1 chunk
                pl.BlockSpec((E_pad, th), lambda i, k: (0, k)),   # W2 chunk
                pl.BlockSpec((th, E_pad), lambda i, k: (k, 0)),   # W3 chunk
            ],
            out_specs=pl.BlockSpec((tm, E_pad), lambda i, k: (i, 0)),
            scratch_shapes=[pltpu.VMEM((tm, E_pad), jnp.float32)],
        ),
        compiler_params=pltpu.CompilerParams(
            dimension_semantics=("parallel", "arbitrary"),
            vmem_limit_bytes=int(vmem_limit_bytes),
        ),
        cost_estimate=cost,
    )(x_p, w1_p, w2_p, w3_p)

    return out_p[:T, :E].reshape(orig_shape)


# ---------------------------------------------------------------------------
# Convenience wrapper (prepares weights per call; prefer prepare_ffn_weights
# once at init + feedforward_pallas_prepared in the hot loop).
# ---------------------------------------------------------------------------
def feedforward_pallas(x, w1, w2, w3, *, compute_dtype=jnp.bfloat16, **kwargs):
    """SwiGLU FFN: (silu(x @ w1) * (x @ w2)) @ w3.

    x : [B, S, E];  w1, w2 : [E, H];  w3 : [H, E]  ->  [B, S, E]
    (w1/w2/w3 are the transposes of the nn.Linear weights.)
    """
    w1_p, w2_p, w3_p = prepare_ffn_weights(w1, w2, w3, compute_dtype)
    return feedforward_pallas_prepared(x, w1_p, w2_p, w3_p, **kwargs)


def feedforward_ref(x, w1, w2, w3):
    h1 = jnp.einsum("bse,eh->bsh", x, w1)
    h2 = jnp.einsum("bse,eh->bsh", x, w2)
    return jnp.einsum("bsh,he->bse", jax.nn.silu(h1) * h2, w3)


if __name__ == "__main__":
    # cfg: emb_dim=32, hidden_dim=64; batch=2, seq=8
    B, S, E, H = 2, 8, 32, 64
    dtype = jnp.float32

    key = jax.random.PRNGKey(0)
    kx, k1, k2, k3 = jax.random.split(key, 4)

    x = jax.random.normal(kx, (B, S, E), dtype=dtype)
    # nn.Linear(emb, hidden).weight has shape [hidden, emb]; we store the
    # transpose [emb, hidden] so the kernel does plain row-major matmuls.
    w1 = jax.random.normal(k1, (E, H), dtype=dtype) * 0.05
    w2 = jax.random.normal(k2, (E, H), dtype=dtype) * 0.05
    w3 = jax.random.normal(k3, (H, E), dtype=dtype) * 0.05

    # Prepare (pad + cast to bf16) once, outside the hot path.
    w1_p, w2_p, w3_p = prepare_ffn_weights(w1, w2, w3, jnp.bfloat16)

    out = feedforward_pallas_prepared(x, w1_p, w2_p, w3_p)
    out = jax.block_until_ready(out)

    ref = feedforward_ref(x, w1, w2, w3)
    assert out.shape == (B, S, E)
    max_err = float(jnp.max(jnp.abs(out - ref)))
    assert jnp.allclose(out, ref, atol=5e-3, rtol=5e-2), \
        f"mismatch vs reference (max abs err {max_err})"

    print("KERNEL_OK")
</pallas_src>

<mosaic_0001>
module attributes {stable_mosaic.version = 11 : i64} {
  func.func @_swiglu_ffn_kernel(%arg0: i32, %arg1: i32, %arg2: memref<16x128xbf16, #tpu.memory_space<vmem>>, %arg3: memref<128x128xbf16, #tpu.memory_space<vmem>>, %arg4: memref<128x128xbf16, #tpu.memory_space<vmem>>, %arg5: memref<128x128xbf16, #tpu.memory_space<vmem>>, %arg6: memref<16x128xf32, #tpu.memory_space<vmem>>, %arg7: memref<16x128xf32, #tpu.memory_space<vmem>>) attributes {dimension_semantics = [#tpu.dimension_semantics<parallel>, #tpu.dimension_semantics<arbitrary>], iteration_bounds = array<i64: 1, 1>, scalar_prefetch = 0 : i64, scratch_operands = 1 : i64, tpu.core_type = #tpu.core_type<tc>, window_params = [{transform_indices = @transform_0, window_bounds = array<i64: 16, 128>}, {transform_indices = @transform_1, window_bounds = array<i64: 128, 128>}, {transform_indices = @transform_2, window_bounds = array<i64: 128, 128>}, {transform_indices = @transform_3, window_bounds = array<i64: 128, 128>}, {transform_indices = @transform_4, window_bounds = array<i64: 16, 128>}]} {
    %c0 = arith.constant 0 : index
    %c0_0 = arith.constant 0 : index
    %0 = vector.load %arg2[%c0, %c0_0] : memref<16x128xbf16, #tpu.memory_space<vmem>>, vector<16x128xbf16>
    %c0_1 = arith.constant 0 : index
    %c0_2 = arith.constant 0 : index
    %1 = vector.load %arg3[%c0_1, %c0_2] : memref<128x128xbf16, #tpu.memory_space<vmem>>, vector<128x128xbf16>
    %cst = arith.constant dense<0.000000e+00> : vector<16x128xf32>
    %2 = tpu.matmul %0, %1, %cst {dimension_numbers = #tpu.dot_dimension_numbers<[1], [0], [0], [1], [0, 0, 1, 1], [], []>} : vector<16x128xbf16>, vector<128x128xbf16>, vector<16x128xf32> -> vector<16x128xf32>
    %c0_3 = arith.constant 0 : index
    %c0_4 = arith.constant 0 : index
    %3 = vector.load %arg4[%c0_3, %c0_4] : memref<128x128xbf16, #tpu.memory_space<vmem>>, vector<128x128xbf16>
    %cst_5 = arith.constant dense<0.000000e+00> : vector<16x128xf32>
    %4 = tpu.matmul %0, %3, %cst_5 {dimension_numbers = #tpu.dot_dimension_numbers<[1], [0], [0], [1], [0, 0, 1, 1], [], []>} : vector<16x128xbf16>, vector<128x128xbf16>, vector<16x128xf32> -> vector<16x128xf32>
    %5 = arith.negf %2 : vector<16x128xf32>
    %6 = math.exp %5 : vector<16x128xf32>
    %cst_6 = arith.constant 1.000000e+00 : f32
    %7 = vector.broadcast %cst_6 : f32 to vector<16x128xf32>
    %8 = arith.addf %7, %6 : vector<16x128xf32>
    %9 = arith.divf %7, %8 : vector<16x128xf32>
    %10 = arith.mulf %2, %9 : vector<16x128xf32>
    %11 = arith.mulf %10, %4 : vector<16x128xf32>
    %12 = arith.truncf %11 : vector<16x128xf32> to vector<16x128xbf16>
    %c0_7 = arith.constant 0 : index
    %c0_8 = arith.constant 0 : index
    %13 = vector.load %arg5[%c0_7, %c0_8] : memref<128x128xbf16, #tpu.memory_space<vmem>>, vector<128x128xbf16>
    %cst_9 = arith.constant dense<0.000000e+00> : vector<16x128xf32>
    %14 = tpu.matmul %12, %13, %cst_9 {dimension_numbers = #tpu.dot_dimension_numbers<[1], [0], [0], [1], [0, 0, 1, 1], [], []>} : vector<16x128xbf16>, vector<128x128xbf16>, vector<16x128xf32> -> vector<16x128xf32>
    %c0_i32 = arith.constant 0 : i32
    %15 = arith.cmpi eq, %arg1, %c0_i32 : i32
    %16 = arith.extui %15 : i1 to i32
    %c0_i32_10 = arith.constant 0 : i32
    %17 = arith.cmpi ne, %16, %c0_i32_10 : i32
    scf.if %17 {
      %c0_15 = arith.constant 0 : index
      %c0_16 = arith.constant 0 : index
      %24 = vector.load %arg7[%c0_15, %c0_16] : memref<16x128xf32, #tpu.memory_space<vmem>>, vector<16x128xf32>
      tpu.vector_store %arg7[%c0_15, %c0_16], %14 {strides = array<i32>} : memref<16x128xf32, #tpu.memory_space<vmem>>, vector<16x128xf32>,
    } else {
    }
    %c0_i32_11 = arith.constant 0 : i32
    %18 = arith.cmpi sgt, %arg1, %c0_i32_11 : i32
    %19 = arith.extui %18 : i1 to i32
    %c0_i32_12 = arith.constant 0 : i32
    %20 = arith.cmpi ne, %19, %c0_i32_12 : i32
    scf.if %20 {
      %c0_15 = arith.constant 0 : index
      %c0_16 = arith.constant 0 : index
      %24 = vector.load %arg7[%c0_15, %c0_16] : memref<16x128xf32, #tpu.memory_space<vmem>>, vector<16x128xf32>
      %25 = arith.addf %24, %14 : vector<16x128xf32>
      %c0_17 = arith.constant 0 : index
      %c0_18 = arith.constant 0 : index
      %26 = vector.load %arg7[%c0_17, %c0_18] : memref<16x128xf32, #tpu.memory_space<vmem>>, vector<16x128xf32>
      tpu.vector_store %arg7[%c0_17, %c0_18], %25 {strides = array<i32>} : memref<16x128xf32, #tpu.memory_space<vmem>>, vector<16x128xf32>,
    } else {
    }
    %c0_i32_13 = arith.constant 0 : i32
    %21 = arith.cmpi eq, %arg1, %c0_i32_13 : i32
    %22 = arith.extui %21 : i1 to i32
    %c0_i32_14 = arith.constant 0 : i32
    %23 = arith.cmpi ne, %22, %c0_i32_14 : i32
    scf.if %23 {
      %c0_15 = arith.constant 0 : index
      %c0_16 = arith.constant 0 : index
      %24 = vector.load %arg7[%c0_15, %c0_16] : memref<16x128xf32, #tpu.memory_space<vmem>>, vector<16x128xf32>
      %c0_17 = arith.constant 0 : index
      %c0_18 = arith.constant 0 : index
      %25 = vector.load %arg6[%c0_17, %c0_18] : memref<16x128xf32, #tpu.memory_space<vmem>>, vector<16x128xf32>
      tpu.vector_store %arg6[%c0_17, %c0_18], %24 {strides = array<i32>} : memref<16x128xf32, #tpu.memory_space<vmem>>, vector<16x128xf32>,
    } else {
    }
    return
  }
  func.func @transform_0(%arg0: i32, %arg1: i32) -> (i32, i32) {
    %c0_i32 = arith.constant 0 : i32
    %c0_i32_0 = arith.constant 0 : i32
    return %arg0, %c0_i32 : i32, i32
  }
  func.func @transform_1(%arg0: i32, %arg1: i32) -> (i32, i32) {
    %c0_i32 = arith.constant 0 : i32
    %c0_i32_0 = arith.constant 0 : i32
    return %c0_i32, %arg1 : i32, i32
  }
  func.func @transform_2(%arg0: i32, %arg1: i32) -> (i32, i32) {
    %c0_i32 = arith.constant 0 : i32
    %c0_i32_0 = arith.constant 0 : i32
    return %c0_i32, %arg1 : i32, i32
  }
  func.func @transform_3(%arg0: i32, %arg1: i32) -> (i32, i32) {
    %c0_i32 = arith.constant 0 : i32
    %c0_i32_0 = arith.constant 0 : i32
    return %arg1, %c0_i32 : i32, i32
  }
  func.func @transform_4(%arg0: i32, %arg1: i32) -> (i32, i32) {
    %c0_i32 = arith.constant 0 : i32
    %c0_i32_0 = arith.constant 0 : i32
    return %arg0, %c0_i32 : i32, i32
  }
}

</mosaic_0001>

<bundles_post_ra>
// kernel: tpu_custom_call.1
= control target key start
LH: loop header
LB: loop body
LE: loop exit
PB: predicated region body
PF: predicated region fallthrough
CT: control target
= control target key end

     0   :  { %9 = vsyncpa [#allocation4], 0  ;;  %s731_s0 = inlined_call_operand.hbm [shape: bf16[16,128], index: 0, kind: input, shape index: {}]   ;;  %s732_s1 = inlined_call_operand.hbm [shape: bf16[128,128], index: 1, kind: input, shape index: {}]   ;;  %s733_s2 = inlined_call_operand.hbm [shape: bf16[128,128], index: 2, kind: input, shape index: {}]   ;;  %s734_s3 = inlined_call_operand.hbm [shape: bf16[128,128], index: 3, kind: input, shape index: {}]   ;;  %s735_s4 = inlined_call_operand.hbm [shape: f32[16,128], index: 4, kind: output, shape index: {}]  }
   0x1   :  { %10 = vsyncpa [#allocation7], 0 }
   0x2   :  { %11 = vsyncpa [#allocation10], 0 }
   0x3   :  { %12 = vsyncpa [#allocation5], 0  ;;  %s30_s17 = sshll.u32 %s732_s1, 4  ;;  %s682_s18 = smov [#allocation6]   ;;  %s31_s17 = int_to_ptr.hbm [resolvable:$true] %s30_s17 }
   0x4   :  { %s32_s19 = sshll.u32 %s682_s18, 4  ;;  %s17_s22 = sshll.u32 %s731_s0, 4  ;;  %s33_s19 = int_to_ptr.vmem [resolvable:$true] %s32_s19  ;;  %s18_s22 = int_to_ptr.hbm [resolvable:$true] %s17_s22 }
   0x5   :  { %s683_s23 = smov 64   ;;  %s684_s24 = smov 4  }
   0x6   :  { %38 = dma.hbm_to_vmem [thread:$0]  %s31_s17, 1024, %s33_s19, [#allocation7], %s683_s23, %s683_s23, %s684_s24  }
   0x7   :  { %s685_s25 = smov [#allocation3]   ;;  %s43_s29 = sshll.u32 %s733_s2, 4  ;;  %s44_s29 = int_to_ptr.hbm [resolvable:$true] %s43_s29 }
   0x8   :  { %s19_s26 = sshll.u32 %s685_s25, 4  ;;  %s56_s5 = sshll.u32 %s734_s3, 4  ;;  %s20_s26 = int_to_ptr.vmem [resolvable:$true] %s19_s26  ;;  %s57_s5 = int_to_ptr.hbm [resolvable:$true] %s56_s5 }
   0x9   :  { %25 = dma.hbm_to_vmem [thread:$0]  %s18_s22, 128, %s20_s26, [#allocation4], %s683_s23, %s683_s23, %s684_s24  }
   0xa   :  { %s686_s6 = smov [#allocation8]   ;;  %s687_s0 = smov [#allocation9]  }
   0xb   :  { %s45_s7 = sshll.u32 %s686_s6, 4  ;;  %s58_s8 = sshll.u32 %s687_s0, 4  ;;  %s46_s7 = int_to_ptr.vmem [resolvable:$true] %s45_s7  ;;  %s59_s8 = int_to_ptr.vmem [resolvable:$true] %s58_s8 }
   0xc   :  { %51 = dma.hbm_to_vmem [thread:$0]  %s44_s29, 1024, %s46_s7, [#allocation7], %s683_s23, %s683_s23, %s684_s24  }
   0xd   :  { %64 = dma.hbm_to_vmem [thread:$0]  %s57_s5, 1024, %s59_s8, [#allocation10], %s683_s23, %s683_s23, %s684_s24  }
   0xe   :  { %674 = dma.done.wait [#allocation4], 128  }
   0xf   :  { %675 = vsyncadd [#allocation4], 4294967168 }
  0x10   :  { %676 = dma.done.wait [#allocation7], 2048  }
  0x11   :  { %677 = vsyncadd [#allocation7], 4294965248 }
  0x12   :  { %678 = dma.done.wait [#allocation10], 1024  }
  0x13   :  { %679 = vsyncadd [#allocation10], 4294966272  ;;  %v520_v0 = vld [vmem:[#allocation6 + $0x38] sm:$0xff]  ;;  %v519_v1 = vld [vmem:[#allocation6 + $0x30] sm:$0xff]  ;;  %s688_s2 = smov [#allocation11]   ;;  %s395_s11 = sshll.u32 %s735_s4, 4  ;;  %s396_s11 = int_to_ptr.hbm [resolvable:$true] %s395_s11 }
  0x14   :  { %153 = vmatpush.bf16.msra.mxu0 %v520_v0  ;;  %v528_v2 = vld [vmem:[#allocation8 + $0x38] sm:$0xff]  ;;  %v527_v3 = vld [vmem:[#allocation8 + $0x30] sm:$0xff]  ;;  %v518_v4 = vld [vmem:[#allocation6 + $0x28] sm:$0xff]  ;;  %s393_s3 = sshll.u32 %s688_s2, 4  ;;  %s689_s12 = smov 128   ;;  %s394_s3 = int_to_ptr.vmem [resolvable:$true] %s393_s3 }
  0x15   :  { %231 = vmatpush.bf16.msra.mxu1 %v528_v2  ;;  %v526_v5 = vld [vmem:[#allocation8 + $0x28] sm:$0xff]  ;;  %v517_v6 = vld [vmem:[#allocation6 + $0x20] sm:$0xff]  ;;  %v516_v8 = vld [vmem:[#allocation6 + $0x18] sm:$0xff]  ;;  %s690_s13 = smov 8  }
  0x16   :  { %v525_v7 = vld [vmem:[#allocation8 + $0x20] sm:$0xff]  ;;  %v524_v9 = vld [vmem:[#allocation8 + $0x18] sm:$0xff]  ;;  %v515_v10 = vld [vmem:[#allocation6 + $0x10] sm:$0xff] }
  0x17   :  { %v523_v11 = vld [vmem:[#allocation8 + $0x10] sm:$0xff]  ;;  %v514_v12 = vld [vmem:[#allocation6 + $0x8] sm:$0xff]  ;;  %v513_v14 = vld [vmem:[#allocation6] sm:$0xff] }
  0x18   :  { %154 = vmatpush.bf16.msra.mxu0 %v519_v1  ;;  %v522_v13 = vld [vmem:[#allocation8 + $0x8] sm:$0xff]  ;;  %v521_v15 = vld [vmem:[#allocation8] sm:$0xff]  ;;  %v512_v16 = vld [vmem:[#allocation3] sm:$0xff] }
  0x19   :  { %232 = vmatpush.bf16.msra.mxu1 %v527_v3  ;;  %v536_v17 = vld [vmem:[#allocation9 + $0x38] sm:$0xff]  ;;  %v535_v18 = vld [vmem:[#allocation9 + $0x30] sm:$0xff]  ;;  %v534_v19 = vld [vmem:[#allocation9 + $0x28] sm:$0xff] }
  0x1a   :  { %352 = vmatpush.bf16.msra.mxu2 %v536_v17  ;;  %v533_v20 = vld [vmem:[#allocation9 + $0x20] sm:$0xff]  ;;  %v532_v21 = vld [vmem:[#allocation9 + $0x18] sm:$0xff]  ;;  %v531_v22 = vld [vmem:[#allocation9 + $0x10] sm:$0xff] }
  0x1b   :  { %v530_v25 = vld [vmem:[#allocation9 + $0x8] sm:$0xff]  ;;  %v529_v26 = vld [vmem:[#allocation9] sm:$0xff] }
  0x1c   :  { %155 = vmatpush.bf16.msra.mxu0 %v518_v4 }
  0x1d   :  { %233 = vmatpush.bf16.msra.mxu1 %v526_v5 }
  0x1e   :  { %353 = vmatpush.bf16.msra.mxu2 %v535_v18 }
  0x20   :  { %156 = vmatpush.bf16.msra.mxu0 %v517_v6 }
  0x21   :  { %234 = vmatpush.bf16.msra.mxu1 %v525_v7 }
  0x22   :  { %354 = vmatpush.bf16.msra.mxu2 %v534_v19 }
  0x24   :  { %157 = vmatpush.bf16.msra.mxu0 %v516_v8 }
  0x25   :  { %235 = vmatpush.bf16.msra.mxu1 %v524_v9 }
  0x26   :  { %355 = vmatpush.bf16.msra.mxu2 %v533_v20 }
  0x28   :  { %158 = vmatpush.bf16.msra.mxu0 %v515_v10 }
  0x29   :  { %236 = vmatpush.bf16.msra.mxu1 %v523_v11 }
  0x2a   :  { %356 = vmatpush.bf16.msra.mxu2 %v532_v21 }
  0x2c   :  { %159 = vmatpush.bf16.msra.mxu0 %v514_v12 }
  0x2d   :  { %237 = vmatpush.bf16.msra.mxu1 %v522_v13 }
  0x2e   :  { %357 = vmatpush.bf16.msra.mxu2 %v531_v22 }
  0x30   :  { %160 = vmatpush.bf16.msra.mxu0 %v513_v14 }
  0x31   :  { %238 = vmatpush.bf16.msra.mxu1 %v521_v15 }
  0x32   :  { %358 = vmatpush.bf16.msra.mxu2 %v530_v25 }
  0x33   :  { %161 = vmatmul.bf16.vlgmr.msra.gmra.mxu0 %v512_v16 }
  0x34   :  { %239 = vmatmul.bf16.vlgmr.msra.gmra.mxu1 %v512_v16 }
  0x36   :  { %359 = vmatpush.bf16.msra.mxu2 %v529_v26 }
  0xb0   :  { %v162_v23 = vpop.f32.mrf.mxu0 }
  0xb1   :  { %v478_v24 = vmul.f32 -1.442695, %v162_v23  ;;  %v240_v42 = vpop.f32.mrf.mxu1 }
  0xb3   :  { %546 = vpow2.f32 %v478_v24 }
  0xb8   :  { %v164_v27 = vpop.f32.mrf.mxu0 }
  0xb9   :  { %v547_v28 = vpop.eup %546  ;;  %v479_v29 = vmul.f32 -1.442695, %v164_v27  ;;  %v242_v56 = vpop.f32.mrf.mxu1 }
  0xba   :  { %v251_v30 = vadd.f32 1.0, %v547_v28 }
  0xbb   :  { %548 = vpow2.f32 %v479_v29 }
  0xbc   :  { %550 = vrcp.f32 %v251_v30  ;;  %v264_v39 = vand.u32 2147483648, %v251_v30  ;;  %vm258_vm1 = vweird.f32 %v251_v30  ;;  %v262_v40 = vand.u32 2147483647, %v251_v30 }
  0xbe   :  { %v265_v45 = vor.u32 1.1754944e-38, %v264_v39  ;;  %vm263_vm3 = vcmp.eq.f32.partialorder %v262_v40, 8.507059e+37 }
  0xc1   :  { %v549_v31 = vpop.eup %548 }
  0xc2   :  { %v551_v32 = vpop.eup %550  ;;  %v252_v33 = vadd.f32 1.0, %v549_v31 }
  0xc3   :  { %v254_v34 = vmul.f32 %v551_v32, %v251_v30  ;;  %vm259_vm0 = vweird.f32 %v551_v32 }
  0xc4   :  { %552 = vrcp.f32 %v252_v33  ;;  %vm260_vm2 = vmor %vm258_vm1, %vm259_vm0  ;;  %v279_v46 = vand.u32 2147483648, %v252_v33  ;;  %v277_v48 = vand.u32 2147483647, %v252_v33  ;;  %vm273_vm5 = vweird.f32 %v252_v33 }
  0xc5   :  { %v255_v35 = vsub.f32 1.0, %v254_v34 }
  0xc6   :  { %v280_v51 = vor.u32 1.1754944e-38, %v279_v46  ;;  %vm278_vm7 = vcmp.eq.f32.partialorder %v277_v48, 8.507059e+37 }
  0xc7   :  { %v256_v36 = vmul.f32 %v551_v32, %v255_v35 }
  0xc9   :  { %v257_v37 = vadd.f32 %v551_v32, %v256_v36 }
  0xca   :  { %v553_v38 = vpop.eup %552 }
  0xcb   :  { %v269_v41 = vmul.f32 %v553_v38, %v252_v33  ;;  %v261_v43 = vsel %vm260_vm2, %v551_v32, %v257_v37  ;;  %vm274_vm4 = vweird.f32 %v553_v38 }
  0xcc   :  { %v266_v49 = vsel %vm263_vm3, %v265_v45, %v261_v43  ;;  %vm275_vm6 = vmor %vm273_vm5, %vm274_vm4 }
  0xcd   :  { %v270_v44 = vsub.f32 1.0, %v269_v41  ;;  %v283_v52 = vmul.f32 %v266_v49, %v162_v23 }
  0xcf   :  { %v271_v47 = vmul.f32 %v553_v38, %v270_v44  ;;  %v285_v57 = vmul.f32 %v283_v52, %v240_v42 }
  0xd1   :  { %v272_v50 = vadd.f32 %v553_v38, %v271_v47 }
  0xd3   :  { %v276_v53 = vsel %vm275_vm6, %v553_v38, %v272_v50 }
  0xd4   :  { %v281_v54 = vsel %vm278_vm7, %v280_v51, %v276_v53 }
  0xd5   :  { %v284_v55 = vmul.f32 %v281_v54, %v164_v27 }
  0xd7   :  { %v286_v58 = vmul.f32 %v284_v55, %v242_v56 }
  0xd9   :  { %v287_v59 = vpack.c.bf16 %v286_v58, %v285_v57 }
  0xdb   :  { %360 = vmatmul.bf16.vlgmr.msra.gmra.mxu2 %v287_v59 }
 0x15e   :  { %v361_v60 = vpop.f32.mrf.mxu2 }
 0x15f   :  { %387 = vst [vmem:[#allocation11] sm:$0xff] %v361_v60 }
 0x166   :  { %v363_v61 = vpop.f32.mrf.mxu2 }
 0x167   :  { %388 = vst [vmem:[#allocation11 + $0x8] sm:$0xff] %v363_v61 }
 0x168   :  { %401 = dma.vmem_to_hbm [thread:$0]  %s394_s3, 256, %s396_s11, [#allocation5], %s689_s12, %s689_s12, %s690_s13  }
 0x169   :  { %680 = dma.done.wait [#allocation5], 256  }
 0x16a   :  { %681 = vsyncadd [#allocation5], 4294967040 }
 0x16b   :  { %406 = vsyncpa [#allocation4], 1 }
 0x16c   :  { %407 = vsyncpa [#allocation7], 1 }
 0x16d   :  { %408 = vsyncpa [#allocation10], 1 }
 0x16e   :  { %409 = vsyncpa [#allocation5], 1 }

</bundles_post_ra>
